<compile_context>
chip_gen: v7x
topology: tpu7x:2x2x1
jax: 0.10.0
libtpu: 0.0.40
codegen_flags: <defaults>
</compile_context>

<pallas_src>
import functools

import jax
import jax.numpy as jnp
from jax import lax
from jax.experimental import pallas as pl
from jax.experimental.pallas import tpu as pltpu

_LANES = 128
_SUBLANES = 8


def _pad_to(n, m):
    return ((n + m - 1) // m) * m


# --------------------------------------------------------------------------
# Kernel: one batch tile.  Output is always lane-dense (out_f, tb).
# --------------------------------------------------------------------------
def _linear_act_kernel(x_ref, w_ref, b_ref, oT_ref, *, x_batch_minor):
    """x_ref: (in_f, tb) if x_batch_minor else (tb, in_f)
    w_ref: (out_f, in_f)  (PyTorch layout, resident in VMEM)
    b_ref: (out_f, 1)     (resident; broadcasts over the lane/batch axis)
    oT_ref: (out_f, tb)   lane-dense -> unmasked full-lane stores
    """
    # Cast W to the streamed dtype (no-op for f32) so bf16 streaming uses the
    # MXU's native bf16 path; accumulation stays f32 via preferred_element_type.
    w = w_ref[...].astype(x_ref.dtype)
    if x_batch_minor:
        # Batch already on the lane axis: plain (out,in) @ (in,tb).
        yT = jnp.dot(w, x_ref[...], preferred_element_type=jnp.float32)
    else:
        # Natural-layout block (tb, in_f): contract over in_f ("NT" matmul).
        # The reorientation work hides under the input DMA instead of being a
        # separate wrapper-side HBM pass.
        yT = lax.dot_general(
            w, x_ref[...],
            dimension_numbers=(((1,), (1,)), ((), ())),
            preferred_element_type=jnp.float32)
    yT = yT + b_ref[...]                       # bias broadcasts over lanes
    oT_ref[...] = jnp.maximum(yT, 0.0).astype(oT_ref.dtype)   # ReLU


# --------------------------------------------------------------------------
# Tiling / VMEM helpers
# --------------------------------------------------------------------------
def _choose_tile(batch, max_tile):
    """Tile = multiple of 128 lanes, sized ~B/n_blocks so zero-padding waste is
    capped; grid kept even (>=2 blocks) for large B so both v7x TensorCores get
    work (measured ~no effect on single-TC v5e/v6e)."""
    n_blocks = max(1, pl.cdiv(batch, max_tile))
    if batch >= 2 * _LANES:
        n_blocks = max(n_blocks, 2)
    if n_blocks > 1 and n_blocks % 2:
        n_blocks += 1
    tile = pl.cdiv(pl.cdiv(batch, n_blocks), _LANES) * _LANES
    n_blocks = pl.cdiv(batch, tile)
    return tile, n_blocks


def _vmem_need_bytes(tile, in_f, out_f, x_batch_minor, x_itemsize, out_itemsize,
                     x_bufs):
    """Approximate pipelined VMEM footprint ((8,128)-padded tiles, double
    buffered) used to set vmem_limit_bytes with headroom."""
    if x_batch_minor:
        x_tile = _pad_to(in_f, _SUBLANES) * tile * x_itemsize
    else:
        x_tile = tile * _pad_to(in_f, _LANES) * x_itemsize
    o_tile = _pad_to(out_f, _SUBLANES) * tile * out_itemsize
    w_tile = _pad_to(out_f, _SUBLANES) * _pad_to(in_f, _LANES) * 4
    b_tile = _pad_to(out_f, _SUBLANES) * _LANES * 4
    return x_bufs * x_tile + 2 * o_tile + w_tile + b_tile


# --------------------------------------------------------------------------
# Shared pallas_call builder
# --------------------------------------------------------------------------
def _run(x_arr, weight, bias, *, x_batch_minor, tile, n_blocks, x_buffer_count):
    out_f, in_f = weight.shape
    bp = tile * n_blocks
    bias2 = bias.reshape(out_f, 1).astype(jnp.float32)
    out_dtype = x_arr.dtype
    x_itemsize = jnp.dtype(x_arr.dtype).itemsize
    out_itemsize = jnp.dtype(out_dtype).itemsize

    if x_batch_minor:
        x_block = (in_f, tile)
        x_index_map = lambda i: (0, i)       # noqa: E731
    else:
        x_block = (tile, in_f)
        x_index_map = lambda i: (i, 0)       # noqa: E731

    x_spec_kwargs = {}
    if x_buffer_count != 2:
        # Optional deeper input buffering (sweep 2 vs 3 if DMA is exposed).
        x_spec_kwargs["pipeline_mode"] = pl.Buffered(x_buffer_count)
    x_spec = pl.BlockSpec(x_block, x_index_map, **x_spec_kwargs)

    vmem_need = _vmem_need_bytes(tile, in_f, out_f, x_batch_minor,
                                 x_itemsize, out_itemsize,
                                 max(2, x_buffer_count))
    vmem_limit = max(16 << 20, int(vmem_need * 1.5) + (4 << 20))

    kernel = functools.partial(_linear_act_kernel, x_batch_minor=x_batch_minor)

    return pl.pallas_call(
        kernel,
        out_shape=jax.ShapeDtypeStruct((out_f, bp), out_dtype),
        grid=(n_blocks,),
        in_specs=[
            x_spec,                                           # x: tiled over batch
            pl.BlockSpec((out_f, in_f), lambda i: (0, 0)),    # W: resident in VMEM
            pl.BlockSpec((out_f, 1), lambda i: (0, 0)),       # bias: resident
        ],
        out_specs=pl.BlockSpec((out_f, tile), lambda i: (0, i)),  # lane-dense y^T
        compiler_params=pltpu.CompilerParams(
            dimension_semantics=("parallel",),   # v7x: shard batch over both TCs
            vmem_limit_bytes=vmem_limit,
        ),
        cost_estimate=pl.CostEstimate(
            flops=2 * bp * in_f * out_f + bp * out_f,
            transcendentals=0,
            bytes_accessed=(bp * in_f * x_itemsize
                            + bp * out_f * out_itemsize
                            + out_f * in_f * weight.dtype.itemsize
                            + out_f * bias.dtype.itemsize),
        ),
    )(x_arr, weight, bias2)


# --------------------------------------------------------------------------
# Entry points
# --------------------------------------------------------------------------
def custom_layer_forward_batch_minor(xT, weight, bias, *, max_tile=65536,
                                     stream_dtype=None, x_buffer_count=2):
    """Preferred production path.

    xT: (in_f, B) batch-minor; returns (out_f, B) batch-minor.
    If B is a multiple of the chosen 128-aligned tile, there are ZERO
    wrapper-side layout passes: the kernel streams x in / y out lane-dense.
    """
    in_f, B = xT.shape
    out_f, in_f_w = weight.shape
    assert in_f == in_f_w
    if stream_dtype is not None:           # lossy; halves HBM bytes
        xT = xT.astype(stream_dtype)
    tile, n_blocks = _choose_tile(B, max_tile)
    bp = tile * n_blocks
    if bp != B:                            # avoid by passing tile-aligned B
        xT = jnp.pad(xT, ((0, 0), (0, bp - B)))
    yT = _run(xT, weight, bias, x_batch_minor=True, tile=tile,
              n_blocks=n_blocks, x_buffer_count=x_buffer_count)
    return yT[:, :B] if bp != B else yT


def custom_layer_forward(x, weight, bias, *, max_tile=16384, stream_dtype=None,
                         x_buffer_count=2):
    """PyTorch-compatible path: x (B, in_f) -> y (B, out_f).

    x is streamed in its natural layout (contiguous HBM DMA); the transpose to
    the lane-dense compute layout happens inside the kernel.  Only one small
    caller-side transpose of the (out_f, B) result remains; for large-B
    production prefer custom_layer_forward_batch_minor.
    """
    B, in_f = x.shape
    out_f, in_f_w = weight.shape
    assert in_f == in_f_w
    if stream_dtype is not None:           # lossy; halves HBM bytes
        x = x.astype(stream_dtype)
    # Natural-layout VMEM tiles pad in_f (10) to 128 lanes, so cap the tile
    # lower than the batch-minor path to stay within scoped VMEM.
    tile, n_blocks = _choose_tile(B, max_tile)
    bp = tile * n_blocks
    if bp != B:
        x = jnp.pad(x, ((0, bp - B), (0, 0)))
    yT = _run(x, weight, bias, x_batch_minor=False, tile=tile,
              n_blocks=n_blocks, x_buffer_count=x_buffer_count)
    return yT[:, :B].T


if __name__ == "__main__":
    key = jax.random.PRNGKey(0)
    kx, kw, kb = jax.random.split(key, 3)

    B, IN, OUT = 8, 10, 10
    x = jax.random.normal(kx, (B, IN), dtype=jnp.float32)
    # Deterministic init mimicking nn.Linear's uniform(-1/sqrt(in), 1/sqrt(in))
    bound = 1.0 / (IN ** 0.5)
    weight = jax.random.uniform(kw, (OUT, IN), minval=-bound, maxval=bound,
                                dtype=jnp.float32)
    bias = jax.random.uniform(kb, (OUT,), minval=-bound, maxval=bound,
                              dtype=jnp.float32)

    ref = jnp.maximum(x @ weight.T + bias, 0.0)

    # PyTorch-layout path (matches the module's (B, 10) -> (B, 10) semantics).
    out = custom_layer_forward(x, weight, bias)
    jax.block_until_ready(out)
    assert out.shape == (B, OUT)
    assert jnp.allclose(out, ref, atol=1e-5, rtol=1e-5)

    # Preferred batch-minor path (zero wrapper layout passes for aligned B).
    outT = custom_layer_forward_batch_minor(x.T, weight, bias)
    jax.block_until_ready(outT)
    assert outT.shape == (OUT, B)
    assert jnp.allclose(outT.T, ref, atol=1e-5, rtol=1e-5)

    print("KERNEL_OK")
</pallas_src>

<mosaic_0001>
module attributes {stable_mosaic.version = 11 : i64} {
  func.func @_linear_act_kernel(%arg0: i32, %arg1: memref<128x10xf32, #tpu.memory_space<vmem>>, %arg2: memref<10x10xf32, #tpu.memory_space<vmem>>, %arg3: memref<10x1xf32, #tpu.memory_space<vmem>>, %arg4: memref<10x128xf32, #tpu.memory_space<vmem>>) attributes {dimension_semantics = [#tpu.dimension_semantics<parallel>], iteration_bounds = array<i64: 1>, scalar_prefetch = 0 : i64, scratch_operands = 0 : i64, tpu.core_type = #tpu.core_type<tc>, window_params = [{transform_indices = @transform_0, window_bounds = array<i64: 128, 10>}, {pipeline_mode = #tpu.pipeline_mode<synchronous>, transform_indices = @transform_1, window_bounds = array<i64: 10, 10>}, {pipeline_mode = #tpu.pipeline_mode<synchronous>, transform_indices = @transform_2, window_bounds = array<i64: 10, 1>}, {transform_indices = @transform_3, window_bounds = array<i64: 10, 128>}]} {
    %c0 = arith.constant 0 : index
    %c0_0 = arith.constant 0 : index
    %0 = vector.load %arg2[%c0, %c0_0] : memref<10x10xf32, #tpu.memory_space<vmem>>, vector<10x10xf32>
    %c0_1 = arith.constant 0 : index
    %c0_2 = arith.constant 0 : index
    %1 = vector.load %arg1[%c0_1, %c0_2] : memref<128x10xf32, #tpu.memory_space<vmem>>, vector<128x10xf32>
    %cst = arith.constant dense<0.000000e+00> : vector<10x128xf32>
    %2 = tpu.matmul %0, %1, %cst {dimension_numbers = #tpu.dot_dimension_numbers<[1], [1], [0], [0], [0, 0, 1, 0], [], []>} : vector<10x10xf32>, vector<128x10xf32>, vector<10x128xf32> -> vector<10x128xf32>
    %c0_3 = arith.constant 0 : index
    %c0_4 = arith.constant 0 : index
    %3 = vector.load %arg3[%c0_3, %c0_4] : memref<10x1xf32, #tpu.memory_space<vmem>>, vector<10x1xf32>
    %4 = vector.broadcast %3 : vector<10x1xf32> to vector<10x128xf32>
    %5 = arith.addf %2, %4 : vector<10x128xf32>
    %cst_5 = arith.constant 0.000000e+00 : f32
    %6 = vector.broadcast %cst_5 : f32 to vector<10x128xf32>
    %7 = arith.maximumf %5, %6 : vector<10x128xf32>
    %c0_6 = arith.constant 0 : index
    %c0_7 = arith.constant 0 : index
    %8 = vector.load %arg4[%c0_6, %c0_7] : memref<10x128xf32, #tpu.memory_space<vmem>>, vector<10x128xf32>
    tpu.vector_store %arg4[%c0_6, %c0_7], %7 {strides = array<i32>} : memref<10x128xf32, #tpu.memory_space<vmem>>, vector<10x128xf32>,
    return
  }
  func.func @transform_0(%arg0: i32) -> (i32, i32) {
    %c0_i32 = arith.constant 0 : i32
    %c0_i32_0 = arith.constant 0 : i32
    return %arg0, %c0_i32 : i32, i32
  }
  func.func @transform_1(%arg0: i32) -> (i32, i32) {
    %c0_i32 = arith.constant 0 : i32
    %c0_i32_0 = arith.constant 0 : i32
    %c0_i32_1 = arith.constant 0 : i32
    return %c0_i32, %c0_i32_0 : i32, i32
  }
  func.func @transform_2(%arg0: i32) -> (i32, i32) {
    %c0_i32 = arith.constant 0 : i32
    %c0_i32_0 = arith.constant 0 : i32
    %c0_i32_1 = arith.constant 0 : i32
    return %c0_i32, %c0_i32_0 : i32, i32
  }
  func.func @transform_3(%arg0: i32) -> (i32, i32) {
    %c0_i32 = arith.constant 0 : i32
    %c0_i32_0 = arith.constant 0 : i32
    return %c0_i32, %arg0 : i32, i32
  }
}

</mosaic_0001>

<bundles_post_ra>
// kernel: tpu_custom_call.1
= control target key start
LH: loop header
LB: loop body
LE: loop exit
PB: predicated region body
PF: predicated region fallthrough
CT: control target
= control target key end

     0   :  { %vm45_vm0 = vcmask 80896   ;;  %v343_v6 = vmov 0   ;;  %s479_s0 = inlined_call_operand.vmem [shape: f32[128,10], index: 0, kind: input, shape index: {}]   ;;  %s480_s1 = inlined_call_operand.vmem [shape: f32[10,10], index: 1, kind: input, shape index: {}]   ;;  %s481_s2 = inlined_call_operand.vmem [shape: f32[10,1], index: 2, kind: input, shape index: {}]   ;;  %s482_s3 = inlined_call_operand.hbm [shape: f32[10,128], index: 3, kind: output, shape index: {}]  }
   0x1   :  { %v17_v0 = vld [vmem:[%s479_s0] sm:$0xff]  ;;  %v18_v1 = vld [vmem:[%s479_s0 + $0x8] sm:$0xff]  ;;  %v19_v2 = vld [vmem:[%s479_s0 + $0x10] sm:$0xff]  ;;  %318 = vset.pattern.permute.xlu0 %v343_v6 }
   0x2   :  { %v266_v3 = vpack.c.bf16 %v18_v1, %v17_v0  ;;  %vm378_vm1 = vmpackc.low %vm45_vm0, %vm45_vm0  ;;  %v20_v5 = vld [vmem:[%s479_s0 + $0x18] sm:$0xff]  ;;  %v15_v8 = vld [vmem:[%s480_s1] sm:$0xff] }
   0x3   :  { %v272_v7 = vpack.c.bf16 %v20_v5, %v19_v2  ;;  %v21_v9 = vld [vmem:[%s479_s0 + $0x20] sm:$0xff]  ;;  %v22_v10 = vld [vmem:[%s479_s0 + $0x28] sm:$0xff]  ;;  %263 = vmatprep.mubr.msk.f32.mxu0 %vm45_vm0, %v15_v8 }
   0x4   :  { %268 = vmatprep.subr.msk.bf16.mxu0 %vm378_vm1, %v266_v3  ;;  %v33_v11 = vld [vmem:[%s481_s2] sm:$0xff] }
   0x5   :  { %271 = vmatpush3.bf16.xpose.msk.msra.mxu0 %vm378_vm1, %v266_v3  ;;  %37 = vperm.xlu0 %318, %v33_v11  }
   0x6   :  { %274 = vmatprep.subr.msk.bf16.mxu0 %vm378_vm1, %v272_v7 }
   0x7   :  { %8 = vsyncpa [#allocation3], 0  ;;  %v34_v12 = vld [vmem:[%s481_s2 + $0x8] sm:$0x3]  ;;  %v278_v13 = vpack.c.bf16 %v22_v10, %v21_v9  ;;  %v23_v14 = vld [vmem:[%s479_s0 + $0x30] sm:$0xff] }
   0x8   :  { %v24_v15 = vld [vmem:[%s479_s0 + $0x38] sm:$0xff]  ;;  %v25_v17 = vld [vmem:[%s479_s0 + $0x40] sm:$0xff]  ;;  %v26_v18 = vld [vmem:[%s479_s0 + $0x48] sm:$0xff] }
   0x9   :  { %42 = vperm.xlu0 %318, %v34_v12   ;;  %v284_v16 = vpack.c.bf16 %v24_v15, %v23_v14  ;;  %v290_v19 = vpack.c.bf16 %v26_v18, %v25_v17  ;;  %v27_v20 = vld [vmem:[%s479_s0 + $0x50] sm:$0xff]  ;;  %v28_v21 = vld [vmem:[%s479_s0 + $0x58] sm:$0xff]  ;;  %v29_v23 = vld [vmem:[%s479_s0 + $0x60] sm:$0xff] }
   0xa   :  { %v296_v22 = vpack.c.bf16 %v28_v21, %v27_v20  ;;  %v30_v24 = vld [vmem:[%s479_s0 + $0x68] sm:$0xff]  ;;  %v31_v26 = vld [vmem:[%s479_s0 + $0x70] sm:$0xff]  ;;  %v32_v27 = vld [vmem:[%s479_s0 + $0x78] sm:$0xff]  ;;  %s344_s0 = smov [#allocation2]  }
   0xb   :  { %v302_v25 = vpack.c.bf16 %v30_v24, %v29_v23  ;;  %v308_v28 = vpack.c.bf16 %v32_v27, %v31_v26  ;;  %v16_v29 = vld [vmem:[%s480_s1 + $0x8] sm:$0x3]  ;;  %s184_s24 = sshll.u32 %s344_s0, 4  ;;  %s185_s24 = int_to_ptr.vmem [resolvable:$true] %s184_s24 }
   0xc   :  { %s319_s25 = scalar_lea.vmem %s185_s24, 256  ;;  %p324_p1 = scmp.lt.s32.totalorder %s185_s24, %s185_s24 }
   0xd   :  { %277 = vmatpush3.bf16.xpose.msk.msra.mxu0 %vm378_vm1, %v272_v7  ;;  %p320_p0 = scmp.ne.s32.totalorder %s185_s24, %s319_s25  ;;  %p325_p2 = scmp.lt.s32.totalorder %s319_s25, %s319_s25 }
   0xe   :  { %280 = vmatprep.subr.msk.bf16.mxu0 %vm378_vm1, %v278_v13 }
   0xf   :  { %p326_p3 = por %p325_p2, %p324_p1 }
  0x11   :  { %p327_p4 = pnand %p326_p3, %p320_p0 }
  0x15   :  { %283 = vmatpush3.bf16.xpose.msk.msra.mxu0 %vm378_vm1, %v278_v13 }
  0x16   :  { %286 = vmatprep.subr.msk.bf16.mxu0 %vm378_vm1, %v284_v16 }
  0x1d   :  { %289 = vmatpush3.bf16.xpose.msk.msra.mxu0 %vm378_vm1, %v284_v16 }
  0x1e   :  { %292 = vmatprep.subr.msk.bf16.mxu0 %vm378_vm1, %v290_v19 }
  0x25   :  { %295 = vmatpush3.bf16.xpose.msk.msra.mxu0 %vm378_vm1, %v290_v19 }
  0x26   :  { %298 = vmatprep.subr.msk.bf16.mxu0 %vm378_vm1, %v296_v22 }
  0x2d   :  { %301 = vmatpush3.bf16.xpose.msk.msra.mxu0 %vm378_vm1, %v296_v22 }
  0x2e   :  { %304 = vmatprep.subr.msk.bf16.mxu0 %vm378_vm1, %v302_v25 }
  0x35   :  { %307 = vmatpush3.bf16.xpose.msk.msra.mxu0 %vm378_vm1, %v302_v25 }
  0x36   :  { %310 = vmatprep.subr.msk.bf16.mxu0 %vm378_vm1, %v308_v28 }
  0x3d   :  { %313 = vmatpush3.bf16.xpose.msk.msra.mxu0 %vm378_vm1, %v308_v28 }
  0x44   :  { %264 = vmatmul.mubr.msk.f32.vlgmr.msra.gmra.mrb[0].mxu0 %vm45_vm0, %v16_v29 }
  0x84   :  { %v38_v30 = vpop.permute.xlu0 %37 }
  0x88   :  { %v43_v31 = vpop.permute.xlu0 %42 }
 0x117   :  { %v265_v32 = vpop.f32.mrb[0].mxu0 }
 0x118   :  { %v172_v33 = vadd.f32 %v265_v32, %v43_v31  ;;  %v166_v34 = vpop.f32.mrb[1].mxu0 }
 0x119   :  { %v167_v35 = vadd.f32 %v166_v34, %v38_v30 }
 0x11a   :  { %v176_v36 = vmax.f32 %v172_v33, 0.0 }
 0x11b   :  { %v175_v37 = vmax.f32 %v167_v35, 0.0 }
 0x11c   :  { %178 = vst [vmem:[#allocation2 + $0x8] sm:$0x3] %v176_v36 }
 0x11d   :  { %177 = vst [vmem:[#allocation2] sm:$0xff] %v175_v37 }
 0x11e   :  { %330 = shalt.err (!%p327_p4)
}
 0x11f   :  { %s331_s27 = scalar_lea.hbm %s482_s3, 256 }
 0x120   :  { %p332_p5 = scmp.ne.s32.totalorder %s482_s3, %s331_s27  ;;  %p335_p6 = scmp.lt.u32.totalorder %s331_s27, %s482_s3 }
 0x122   :  { %p337_p7 = pnand %p335_p6, %p332_p5 }
 0x124   :  { %340 = shalt.err (!%p337_p7)
}
 0x125   :  { %s345_s5 = smov 128   ;;  %s346_s6 = smov 8  }
 0x126   :  { %190 = dma.vmem_to_hbm [thread:$0]  %s185_s24, 256, %s482_s3, [#allocation3], %s345_s5, %s345_s5, %s346_s6  }
 0x127   :  { %341 = dma.done.wait [#allocation3], 256  }
 0x128   :  { %342 = vsyncadd [#allocation3], 4294967040 }
 0x129   :  { %194 = vsyncpa [#allocation3], 1 }

</bundles_post_ra>
